<compile_context>
chip_gen: v6e
topology: v6e:2x2x1
jax: 0.10.0
libtpu: 0.0.40
codegen_flags: <defaults>
</compile_context>

<pallas_src>
import jax
import jax.numpy as jnp
from jax.experimental import pallas as pl
from jax.experimental.pallas import tpu as pltpu

INPUT_SIZE = 3
HIDDEN_SIZE = 5
OUTPUT_SIZE = 2

LANE = 128      # lane width: hidden/output feature dims live in one lane-wide vreg
SUBLANE = 8     # sublane width: weight contraction dims padded here (once, off hot path)


def _mlp_kernel(x_ref, w1_ref, b1_ref, w2_ref, b2_ref, o_ref):
    # x_ref:  (Bp, INPUT_SIZE)   natural, un-padded
    # w1_ref: (SUBLANE, LANE)    rows 0:3 = fc1.weight.T, cols 0:5 real, rest zero
    # b1_ref: (1, LANE)          cols 0:5 = fc1.bias, rest zero
    # w2_ref: (SUBLANE, LANE)    rows 0:5 = fc2.weight.T, cols 0:2 real, rest zero
    # b2_ref: (1, LANE)          cols 0:2 = fc2.bias, rest zero
    # o_ref:  (Bp, OUTPUT_SIZE)  natural
    x = x_ref[...]                                    # (Bp, 3) f32

    # fc1 + bias: exact-f32 VPU unroll (3 broadcast multiply-adds), no MXU.
    h = x[:, 0:1] * w1_ref[0:1, :] + b1_ref[...]      # (Bp, LANE)
    for k in range(1, INPUT_SIZE):                    # static unroll
        h = h + x[:, k:k + 1] * w1_ref[k:k + 1, :]
    h = jnp.maximum(h, 0.0)                           # ReLU (padded lanes stay 0)

    # fc2 + bias: exact-f32 VPU unroll (5 broadcast multiply-adds).
    y = h[:, 0:1] * w2_ref[0:1, :] + b2_ref[...]      # (Bp, LANE)
    for k in range(1, HIDDEN_SIZE):
        y = y + h[:, k:k + 1] * w2_ref[k:k + 1, :]

    # Only the first OUTPUT_SIZE lanes are real; write the natural-width output.
    o_ref[...] = y[:, :OUTPUT_SIZE].astype(o_ref.dtype)


def _pad_to(a, shape):
    pads = [(0, s - d) for d, s in zip(a.shape, shape)]
    return jnp.pad(a, pads)


def prepare_params(w1, b1, w2, b2):
    """One-time parameter prep: PyTorch nn.Linear layout -> (in, out), each
    weight padded to a single (8, 128) f32 tile.  Padding is numerically
    exact: padded rows are never read; padded lanes have zero weight + bias."""
    w1_p = _pad_to(w1.T.astype(jnp.float32), (SUBLANE, LANE))   # (3,5)  -> (8,128)
    b1_p = _pad_to(b1.reshape(1, -1).astype(jnp.float32), (1, LANE))
    w2_p = _pad_to(w2.T.astype(jnp.float32), (SUBLANE, LANE))   # (5,2)  -> (8,128)
    b2_p = _pad_to(b2.reshape(1, -1).astype(jnp.float32), (1, LANE))
    return w1_p, b1_p, w2_p, b2_p


@jax.jit
def simple_nn_forward(x, w1_p, b1_p, w2_p, b2_p):
    """x: (B, INPUT_SIZE) f32; params pre-padded by prepare_params()."""
    B = x.shape[0]
    Bp = ((B + SUBLANE - 1) // SUBLANE) * SUBLANE
    x32 = x.astype(jnp.float32)
    if Bp != B:     # no extra HLO when B % 8 == 0 (as in the demo)
        x32 = jnp.pad(x32, ((0, Bp - B), (0, 0)))

    # VPU unroll: (3 + 5) multiply-adds over a (Bp, LANE) f32 tile, plus ReLU.
    flops = 2 * (INPUT_SIZE + HIDDEN_SIZE) * Bp * LANE
    bytes_accessed = 4 * (Bp * INPUT_SIZE + 2 * SUBLANE * LANE + 2 * LANE
                          + Bp * OUTPUT_SIZE)

    out = pl.pallas_call(
        _mlp_kernel,
        out_shape=jax.ShapeDtypeStruct((Bp, OUTPUT_SIZE), jnp.float32),
        in_specs=[
            pl.BlockSpec(memory_space=pltpu.MemorySpace.VMEM),  # x  (Bp, 3)
            pl.BlockSpec(memory_space=pltpu.MemorySpace.VMEM),  # w1 (8, 128)
            pl.BlockSpec(memory_space=pltpu.MemorySpace.VMEM),  # b1 (1, 128)
            pl.BlockSpec(memory_space=pltpu.MemorySpace.VMEM),  # w2 (8, 128)
            pl.BlockSpec(memory_space=pltpu.MemorySpace.VMEM),  # b2 (1, 128)
        ],
        out_specs=pl.BlockSpec(memory_space=pltpu.MemorySpace.VMEM),
        cost_estimate=pl.CostEstimate(flops=flops, transcendentals=0,
                                      bytes_accessed=bytes_accessed),
    )(x32, w1_p, b1_p, w2_p, b2_p)

    if Bp != B:
        out = out[:B]
    return out


def _reference(x, w1, b1, w2, b2):
    h = jnp.maximum(
        jnp.dot(x, w1.T, precision=jax.lax.Precision.HIGHEST) + b1, 0.0)
    return jnp.dot(h, w2.T, precision=jax.lax.Precision.HIGHEST) + b2


if __name__ == "__main__":
    key = jax.random.PRNGKey(0)
    k_x, k_w1, k_b1, k_w2, k_b2 = jax.random.split(key, 5)

    batch = 8
    x = jax.random.normal(k_x, (batch, INPUT_SIZE), dtype=jnp.float32)

    # Deterministic parameters (PyTorch nn.Linear shapes: weight = (out, in)).
    w1 = jax.random.normal(k_w1, (HIDDEN_SIZE, INPUT_SIZE), dtype=jnp.float32) * 0.5
    b1 = jax.random.normal(k_b1, (HIDDEN_SIZE,), dtype=jnp.float32) * 0.1
    w2 = jax.random.normal(k_w2, (OUTPUT_SIZE, HIDDEN_SIZE), dtype=jnp.float32) * 0.5
    b2 = jax.random.normal(k_b2, (OUTPUT_SIZE,), dtype=jnp.float32) * 0.1

    params = prepare_params(w1, b1, w2, b2)   # one-time glue, off the hot path

    out = simple_nn_forward(x, *params)
    out = jax.block_until_ready(out)

    ref = _reference(x, w1, b1, w2, b2)
    assert out.shape == (batch, OUTPUT_SIZE)
    assert jnp.allclose(out, ref, atol=1e-5, rtol=1e-5)

    print("KERNEL_OK")
</pallas_src>

<mosaic_0001>
module attributes {stable_mosaic.version = 11 : i64} {
  func.func @_mlp_kernel(%arg0: memref<8x3xf32, #tpu.memory_space<vmem>>, %arg1: memref<8x128xf32, #tpu.memory_space<vmem>>, %arg2: memref<1x128xf32, #tpu.memory_space<vmem>>, %arg3: memref<8x128xf32, #tpu.memory_space<vmem>>, %arg4: memref<1x128xf32, #tpu.memory_space<vmem>>, %arg5: memref<8x2xf32, #tpu.memory_space<vmem>>) attributes {dimension_semantics = [], scalar_prefetch = 0 : i64, scratch_operands = 0 : i64, tpu.core_type = #tpu.core_type<tc>} {
    %c0 = arith.constant 0 : index
    %c0_0 = arith.constant 0 : index
    %0 = vector.load %arg0[%c0, %c0_0] : memref<8x3xf32, #tpu.memory_space<vmem>>, vector<8x3xf32>
    %1 = vector.extract_strided_slice %0 {offsets = [0, 0], sizes = [8, 1], strides = [1, 1]} : vector<8x3xf32> to vector<8x1xf32>
    %c0_1 = arith.constant 0 : index
    %c0_2 = arith.constant 0 : index
    %2 = vector.load %arg1[%c0_1, %c0_2] : memref<8x128xf32, #tpu.memory_space<vmem>>, vector<1x128xf32>
    %3 = vector.broadcast %1 : vector<8x1xf32> to vector<8x128xf32>
    %4 = vector.broadcast %2 : vector<1x128xf32> to vector<8x128xf32>
    %5 = arith.mulf %3, %4 : vector<8x128xf32>
    %c0_3 = arith.constant 0 : index
    %c0_4 = arith.constant 0 : index
    %6 = vector.load %arg2[%c0_3, %c0_4] : memref<1x128xf32, #tpu.memory_space<vmem>>, vector<1x128xf32>
    %7 = vector.broadcast %6 : vector<1x128xf32> to vector<8x128xf32>
    %8 = arith.addf %5, %7 : vector<8x128xf32>
    %9 = vector.extract_strided_slice %0 {offsets = [0, 1], sizes = [8, 1], strides = [1, 1]} : vector<8x3xf32> to vector<8x1xf32>
    %c1 = arith.constant 1 : index
    %c0_5 = arith.constant 0 : index
    %10 = vector.load %arg1[%c1, %c0_5] : memref<8x128xf32, #tpu.memory_space<vmem>>, vector<1x128xf32>
    %11 = vector.broadcast %9 : vector<8x1xf32> to vector<8x128xf32>
    %12 = vector.broadcast %10 : vector<1x128xf32> to vector<8x128xf32>
    %13 = arith.mulf %11, %12 : vector<8x128xf32>
    %14 = arith.addf %8, %13 : vector<8x128xf32>
    %15 = vector.extract_strided_slice %0 {offsets = [0, 2], sizes = [8, 1], strides = [1, 1]} : vector<8x3xf32> to vector<8x1xf32>
    %c2 = arith.constant 2 : index
    %c0_6 = arith.constant 0 : index
    %16 = vector.load %arg1[%c2, %c0_6] : memref<8x128xf32, #tpu.memory_space<vmem>>, vector<1x128xf32>
    %17 = vector.broadcast %15 : vector<8x1xf32> to vector<8x128xf32>
    %18 = vector.broadcast %16 : vector<1x128xf32> to vector<8x128xf32>
    %19 = arith.mulf %17, %18 : vector<8x128xf32>
    %20 = arith.addf %14, %19 : vector<8x128xf32>
    %cst = arith.constant 0.000000e+00 : f32
    %21 = vector.broadcast %cst : f32 to vector<8x128xf32>
    %22 = arith.maximumf %20, %21 : vector<8x128xf32>
    %23 = vector.extract_strided_slice %22 {offsets = [0, 0], sizes = [8, 1], strides = [1, 1]} : vector<8x128xf32> to vector<8x1xf32>
    %c0_7 = arith.constant 0 : index
    %c0_8 = arith.constant 0 : index
    %24 = vector.load %arg3[%c0_7, %c0_8] : memref<8x128xf32, #tpu.memory_space<vmem>>, vector<1x128xf32>
    %25 = vector.broadcast %23 : vector<8x1xf32> to vector<8x128xf32>
    %26 = vector.broadcast %24 : vector<1x128xf32> to vector<8x128xf32>
    %27 = arith.mulf %25, %26 : vector<8x128xf32>
    %c0_9 = arith.constant 0 : index
    %c0_10 = arith.constant 0 : index
    %28 = vector.load %arg4[%c0_9, %c0_10] : memref<1x128xf32, #tpu.memory_space<vmem>>, vector<1x128xf32>
    %29 = vector.broadcast %28 : vector<1x128xf32> to vector<8x128xf32>
    %30 = arith.addf %27, %29 : vector<8x128xf32>
    %31 = vector.extract_strided_slice %22 {offsets = [0, 1], sizes = [8, 1], strides = [1, 1]} : vector<8x128xf32> to vector<8x1xf32>
    %c1_11 = arith.constant 1 : index
    %c0_12 = arith.constant 0 : index
    %32 = vector.load %arg3[%c1_11, %c0_12] : memref<8x128xf32, #tpu.memory_space<vmem>>, vector<1x128xf32>
    %33 = vector.broadcast %31 : vector<8x1xf32> to vector<8x128xf32>
    %34 = vector.broadcast %32 : vector<1x128xf32> to vector<8x128xf32>
    %35 = arith.mulf %33, %34 : vector<8x128xf32>
    %36 = arith.addf %30, %35 : vector<8x128xf32>
    %37 = vector.extract_strided_slice %22 {offsets = [0, 2], sizes = [8, 1], strides = [1, 1]} : vector<8x128xf32> to vector<8x1xf32>
    %c2_13 = arith.constant 2 : index
    %c0_14 = arith.constant 0 : index
    %38 = vector.load %arg3[%c2_13, %c0_14] : memref<8x128xf32, #tpu.memory_space<vmem>>, vector<1x128xf32>
    %39 = vector.broadcast %37 : vector<8x1xf32> to vector<8x128xf32>
    %40 = vector.broadcast %38 : vector<1x128xf32> to vector<8x128xf32>
    %41 = arith.mulf %39, %40 : vector<8x128xf32>
    %42 = arith.addf %36, %41 : vector<8x128xf32>
    %43 = vector.extract_strided_slice %22 {offsets = [0, 3], sizes = [8, 1], strides = [1, 1]} : vector<8x128xf32> to vector<8x1xf32>
    %c3 = arith.constant 3 : index
    %c0_15 = arith.constant 0 : index
    %44 = vector.load %arg3[%c3, %c0_15] : memref<8x128xf32, #tpu.memory_space<vmem>>, vector<1x128xf32>
    %45 = vector.broadcast %43 : vector<8x1xf32> to vector<8x128xf32>
    %46 = vector.broadcast %44 : vector<1x128xf32> to vector<8x128xf32>
    %47 = arith.mulf %45, %46 : vector<8x128xf32>
    %48 = arith.addf %42, %47 : vector<8x128xf32>
    %49 = vector.extract_strided_slice %22 {offsets = [0, 4], sizes = [8, 1], strides = [1, 1]} : vector<8x128xf32> to vector<8x1xf32>
    %c4 = arith.constant 4 : index
    %c0_16 = arith.constant 0 : index
    %50 = vector.load %arg3[%c4, %c0_16] : memref<8x128xf32, #tpu.memory_space<vmem>>, vector<1x128xf32>
    %51 = vector.broadcast %49 : vector<8x1xf32> to vector<8x128xf32>
    %52 = vector.broadcast %50 : vector<1x128xf32> to vector<8x128xf32>
    %53 = arith.mulf %51, %52 : vector<8x128xf32>
    %54 = arith.addf %48, %53 : vector<8x128xf32>
    %55 = vector.extract_strided_slice %54 {offsets = [0, 0], sizes = [8, 2], strides = [1, 1]} : vector<8x128xf32> to vector<8x2xf32>
    %c0_17 = arith.constant 0 : index
    %c0_18 = arith.constant 0 : index
    %56 = vector.load %arg5[%c0_17, %c0_18] : memref<8x2xf32, #tpu.memory_space<vmem>>, vector<8x2xf32>
    tpu.vector_store %arg5[%c0_17, %c0_18], %55 {strides = array<i32>} : memref<8x2xf32, #tpu.memory_space<vmem>>, vector<8x2xf32>,
    return
  }
}

</mosaic_0001>

<bundles_post_ra>
// kernel: simple_nn_forward.1
= control target key start
LH: loop header
LB: loop body
LE: loop exit
PB: predicated region body
PF: predicated region fallthrough
CT: control target
= control target key end

     0   :  { %v156_v0 = vmov 0   ;;  %v157_v2 = vmov 2   ;;  %v158_v3 = vmov 1   ;;  %v159_v18 = vmov 4   ;;  %s227_s0 = inlined_call_operand.vmem [shape: f32[8,3], index: 0, kind: input, shape index: {}]   ;;  %s228_s1 = inlined_call_operand.vmem [shape: f32[8,128], index: 1, kind: input, shape index: {}]   ;;  %s229_s2 = inlined_call_operand.vmem [shape: f32[1,128], index: 2, kind: input, shape index: {}]   ;;  %s230_s3 = inlined_call_operand.vmem [shape: f32[8,128], index: 3, kind: input, shape index: {}]   ;;  %s231_s4 = inlined_call_operand.vmem [shape: f32[1,128], index: 4, kind: input, shape index: {}]   ;;  %s232_s5 = inlined_call_operand.vmem [shape: f32[8,2], index: 5, kind: output, shape index: {}]  }
   0x1   :  { %147 = vset.pattern.permute.xlu0 %v156_v0  ;;  %v20_v1 = vld [vmem:[%s227_s0] sm:$0xff]  ;;  %149 = vset.pattern.permute.xlu1 %v157_v2  ;;  %v160_v19 = vmov 3   ;;  %vm126_vm0 = vcmask 15360  }
   0x2   :  { %24 = vperm.xlu0 %147, %v20_v1   ;;  %53 = vperm.xlu1 %149, %v20_v1   ;;  %v132_v4 = vld [vmem:[%s228_s1] ss:$0 sm:$0xff]  ;;  %v134_v8 = vld [vmem:[%s228_s1 + $0x1] ss:$0 sm:$0xff]  ;;  %v135_v9 = vld [vmem:[%s228_s1 + $0x2] ss:$0 sm:$0xff] }
   0x3   :  { %v133_v7 = vld [vmem:[%s229_s2] ss:$0 sm:$0xff]  ;;  %v138_v24 = vld [vmem:[%s230_s3 + $0x1] ss:$0 sm:$0xff]  ;;  %v139_v28 = vld [vmem:[%s230_s3 + $0x2] ss:$0 sm:$0xff] }
   0x4   :  { %v136_v20 = vld [vmem:[%s230_s3] ss:$0 sm:$0xff]  ;;  %v140_v31 = vld [vmem:[%s230_s3 + $0x3] ss:$0 sm:$0xff]  ;;  %v141_v36 = vld [vmem:[%s230_s3 + $0x4] ss:$0 sm:$0xff] }
   0x5   :  { %v137_v23 = vld [vmem:[%s231_s4] ss:$0 sm:$0xff] }
   0x6   :  { %148 = vset.pattern.permute.xlu0 %v158_v3  ;;  %150 = vset.pattern.permute.xlu1 %v156_v0 }
   0x7   :  { %42 = vperm.xlu0 %148, %v20_v1  }
   0xb   :  { %152 = vset.pattern.permute.xlu0 %v157_v2 }
  0x7d   :  { %v25_v5 = vpop.permute.xlu0 %24  ;;  %v54_v10 = vpop.permute.xlu1 %53 }
  0x7e   :  { %v31_v6 = vmul.f32 %v132_v4, %v25_v5  ;;  %v60_v14 = vmul.f32 %v135_v9, %v54_v10 }
  0x80   :  { %v39_v12 = vadd.f32 %v133_v7, %v31_v6 }
  0x82   :  { %v43_v11 = vpop.permute.xlu0 %42 }
  0x83   :  { %v49_v13 = vmul.f32 %v134_v8, %v43_v11 }
  0x85   :  { %v50_v15 = vadd.f32 %v49_v13, %v39_v12 }
  0x87   :  { %v61_v16 = vadd.f32 %v60_v14, %v50_v15 }
  0x89   :  { %v62_v17 = vmax.f32 %v61_v16, 0.0 }
  0x8b   :  { %95 = vperm.xlu0 %152, %v62_v17   ;;  %66 = vperm.xlu1 %150, %v62_v17  }
  0x8f   :  { %151 = vset.pattern.permute.xlu1 %v158_v3  ;;  %155 = vset.pattern.permute.xlu0 %v159_v18 }
  0x90   :  { %84 = vperm.xlu1 %151, %v62_v17  }
  0x94   :  { %153 = vset.pattern.permute.xlu1 %v160_v19 }
  0x95   :  { %106 = vperm.xlu1 %153, %v62_v17  }
  0x99   :  { %154 = vset.pattern.permute.xlu1 %v159_v18 }
  0x9a   :  { %117 = vperm.xlu1 %154, %v62_v17  }
 0x106   :  { %v67_v21 = vpop.permute.xlu1 %66  ;;  %v96_v29 = vpop.permute.xlu0 %95 }
 0x107   :  { %v73_v22 = vmul.f32 %v136_v20, %v67_v21  ;;  %v102_v32 = vmul.f32 %v139_v28, %v96_v29 }
 0x109   :  { %v81_v26 = vadd.f32 %v137_v23, %v73_v22 }
 0x10b   :  { %v85_v25 = vpop.permute.xlu1 %84 }
 0x10c   :  { %v91_v27 = vmul.f32 %v138_v24, %v85_v25 }
 0x10e   :  { %v92_v30 = vadd.f32 %v91_v27, %v81_v26 }
 0x110   :  { %v107_v33 = vpop.permute.xlu1 %106  ;;  %v103_v34 = vadd.f32 %v102_v32, %v92_v30 }
 0x111   :  { %v113_v35 = vmul.f32 %v140_v31, %v107_v33 }
 0x113   :  { %v114_v38 = vadd.f32 %v113_v35, %v103_v34 }
 0x115   :  { %v118_v37 = vpop.permute.xlu1 %117 }
 0x116   :  { %v124_v39 = vmul.f32 %v141_v36, %v118_v37 }
 0x118   :  { %v125_v40 = vadd.f32 %v124_v39, %v114_v38 }
 0x11a   :  { %127 = vst.msk [vmem:[%s232_s5] sm:$0xff] %vm126_vm0, %v125_v40 }

</bundles_post_ra>
